<compile_context>
chip_gen: v5e
topology: v5e:2x2
jax: 0.10.0
libtpu: 0.0.40
codegen_flags: <defaults>
</compile_context>

<pallas_src>
import functools

import jax
import jax.numpy as jnp
from jax.experimental import pallas as pl
from jax.experimental.pallas import tpu as pltpu

LANES = 128                 # TPU lane width
USE_BF16_MATMUL = True      # bf16 MXU inputs, f32 accumulation (PyTorch ref is f32)
_TILE_R_MAX = 512           # packed rows per grid step (512 rows * 16 samples = 8192 samples)


def _round_up(a, m):
    return (a + m - 1) // m * m


def _cdiv(a, b):
    return (a + b - 1) // b


# ---------------------------------------------------------------------------
# nn_dim parsing — mirrors Model.generate_layers (linear path) ordering.
# TODO(synk): the conv branch (Model.generate_layers_conv) is not implemented.
# ---------------------------------------------------------------------------
def parse_nn_dim(nn_dim):
    """Returns (linear widths, per-linear tuple of trailing activation names)."""
    structure = [e for e in nn_dim if isinstance(e, int)]
    seq = [("linear", i) for i in range(len(structure) - 1)]
    for i, e in enumerate(nn_dim):
        if isinstance(e, str):
            seq.insert(i - 1, ("act", e.lower()))
    acts, cur = [], None
    for kind, val in seq:
        if kind == "linear":
            if cur is not None:
                acts.append(tuple(cur))
            cur = []
        elif cur is not None:
            cur.append(val)
    acts.append(tuple(cur if cur is not None else ()))
    return structure, tuple(acts)


def _apply_act(h, name):
    if name == "relu":
        return jnp.maximum(h, 0.0)
    if name == "sigmoid":
        return jax.nn.sigmoid(h)
    if name == "tanh":
        return jnp.tanh(h)
    raise ValueError(f"unsupported activation '{name}'")


# ---------------------------------------------------------------------------
# Kernel: lane-packed fused MLP (band matmuls + activations) + segmented softmax.
# Each 128-lane row holds P = 128 // n_out samples; sample p's logits live in the
# aligned lane group [p*n_out, (p+1)*n_out).
# ---------------------------------------------------------------------------
def _mlp_softmax_kernel(x_ref, *refs, n_out, bands, activations):
    *param_refs, o_ref = refs

    h = x_ref[...]                                   # bf16 (or f32) packed input tile
    for li, (nb, in_w, out_w) in enumerate(bands):
        w_ref = param_refs[2 * li]                   # (in_w, out_w) band weight
        b_ref = param_refs[2 * li + 1]               # (1, p * dout) tiled bias, f32
        parts = [
            jnp.dot(h[:, r * in_w:(r + 1) * in_w].astype(w_ref.dtype), w_ref[...],
                    preferred_element_type=jnp.float32)
            for r in range(nb)
        ]
        h = (parts[0] if nb == 1 else jnp.concatenate(parts, axis=1)) + b_ref[...]
        for act in activations[li]:
            h = _apply_act(h, act)

    logits = h                                       # (tile_r, 128), f32
    rows, lanes = logits.shape

    if n_out == 1:                                   # softmax over a single class
        o_ref[...] = jnp.ones_like(logits)
        return

    lane = jax.lax.broadcasted_iota(jnp.int32, (rows, lanes), 1)
    m = lane % n_out                                 # offset within the sample's group

    # One-time probe: does pltpu.roll(v, s) fetch the value from lane i+s or i-s?
    # Makes the butterfly below correct regardless of the roll sign convention.
    roll_fetches_up = ((pltpu.roll(lane, 1, axis=1) - lane) & (lanes - 1)) == 1

    # Butterfly steps: at step s, lane i combines with lane i ^ s (always in-group
    # because n_out is a power of two and groups are n_out-aligned).
    shifts = []
    s = 1
    while s < n_out:
        shifts.append((s, (m & s) == 0))             # partner is at +s iff bit s clear
        s *= 2

    def seg_allreduce(v, op):
        """Exact all-reduce within each aligned n_out-lane group (no double counting)."""
        for sh, partner_is_up in shifts:
            a = pltpu.roll(v, sh, axis=1)
            b = pltpu.roll(v, lanes - sh, axis=1)
            partner = jnp.where(partner_is_up == roll_fetches_up, a, b)
            v = op(v, partner)
        return v

    gmax = seg_allreduce(logits, jnp.maximum)        # per-sample max (broadcast in group)
    e = jnp.exp(logits - gmax)
    denom = seg_allreduce(e, lambda u, w: u + w)     # per-sample sum, exact
    o_ref[...] = e / denom                           # exact divide: rows sum to 1


# ---------------------------------------------------------------------------
# Parameter packing: 128-lane-aligned band (block-diagonal) weights + tiled biases.
# ---------------------------------------------------------------------------
def _band_group(p, din, dout):
    g = 1
    while g < p:
        if (g * din) % LANES == 0 and (g * dout) % LANES == 0:
            return g
        g *= 2
    return p


def pack_params(params):
    """params: list of (W (din,dout), b (1,dout)). Returns (arrays, band meta, n_out)."""
    n_out = params[-1][0].shape[1]
    assert LANES % n_out == 0, "number of actions must divide 128 for lane packing"
    p = LANES // n_out
    mm_dtype = jnp.bfloat16 if USE_BF16_MATMUL else jnp.float32

    packed, bands = [], []
    for w, b in params:
        din, dout = w.shape
        g = _band_group(p, din, dout)                # samples per band
        wb = jnp.kron(jnp.eye(g, dtype=jnp.float32),
                      w.astype(jnp.float32)).astype(mm_dtype)
        bt = jnp.tile(b.astype(jnp.float32).reshape(1, dout), (1, p))
        packed += [wb, bt]
        bands.append((p // g, g * din, g * dout))    # (num bands, band in width, band out width)
    return tuple(packed), tuple(bands), n_out


# ---------------------------------------------------------------------------
# Wrapper
# ---------------------------------------------------------------------------
@functools.partial(jax.jit, static_argnames=("bands", "activations", "n_out"))
def model_forward(x, packed_params, *, bands, activations, n_out):
    """x: (batch, d_in) -> (batch, n_out) softmax probabilities (float32)."""
    batch, d_in = x.shape
    p = LANES // n_out
    mm_dtype = jnp.bfloat16 if USE_BF16_MATMUL else jnp.float32
    row_mult = 16 if mm_dtype == jnp.bfloat16 else 8

    rows = _cdiv(batch, p)                           # packed rows needed
    # Big tiles amortize the ~0.35us/step pipeline overhead; cap so the grid keeps
    # >= 2 steps when there is enough work (2 TensorCores on v7x).
    tile_r = max(row_mult, min(_TILE_R_MAX, _round_up(_cdiv(rows, 2), row_mult)))
    rows_padded = _round_up(rows, tile_r)
    batch_padded = rows_padded * p

    xq = x.astype(mm_dtype)                          # matches x.float(); bf16 halves input DMA
    if batch_padded != batch:
        xq = jnp.pad(xq, ((0, batch_padded - batch), (0, 0)))
    xp = xq.reshape(rows_padded, p * d_in)           # 16 samples per 128-lane-friendly row

    grid = (rows_padded // tile_r,)
    kernel = functools.partial(_mlp_softmax_kernel, n_out=n_out, bands=bands,
                               activations=activations)

    const = lambda i: (0, 0)
    in_specs = [pl.BlockSpec((tile_r, p * d_in), lambda i: (i, 0))]     # x tile
    for a in packed_params:                                             # weights / biases
        in_specs.append(pl.BlockSpec(a.shape, const))
    out_specs = pl.BlockSpec((tile_r, LANES), lambda i: (i, 0))         # lane-dense output

    flops = 2 * rows_padded * sum(nb * in_w * out_w for nb, in_w, out_w in bands)
    bytes_accessed = (xp.size * xp.dtype.itemsize + rows_padded * LANES * 4
                      + sum(int(a.size) * a.dtype.itemsize for a in packed_params))
    cost = pl.CostEstimate(flops=int(flops),
                           transcendentals=int(rows_padded * LANES),
                           bytes_accessed=int(bytes_accessed))

    out_packed = pl.pallas_call(
        kernel,
        out_shape=jax.ShapeDtypeStruct((rows_padded, LANES), jnp.float32),
        grid=grid,
        in_specs=in_specs,
        out_specs=out_specs,
        compiler_params=pltpu.CompilerParams(
            dimension_semantics=("parallel",),       # megacore / 2-TC sharding
            vmem_limit_bytes=32 * 1024 * 1024),
        cost_estimate=cost,
    )(xp, *packed_params)

    # contiguous reshape back to (batch, n_out); drop padded samples
    return out_packed.reshape(batch_padded, n_out)[:batch]


# ---------------------------------------------------------------------------
# Reference (plain JAX, f32) and nn.Linear-style init U(-1/sqrt(fan_in), 1/sqrt(fan_in))
# ---------------------------------------------------------------------------
def reference_forward(x, params, activations):
    h = x.astype(jnp.float32)
    for (w, b), acts in zip(params, activations):
        h = h @ w + b
        for a in acts:
            h = _apply_act(h, a)
    return jax.nn.softmax(h, axis=1)


def init_params(key, dims):
    """Weights stored as (in, out); biases as (1, out)."""
    params = []
    for d_in, d_out in zip(dims[:-1], dims[1:]):
        key, kw, kb = jax.random.split(key, 3)
        bound = 1.0 / jnp.sqrt(jnp.float32(d_in))
        w = jax.random.uniform(kw, (d_in, d_out), jnp.float32, -bound, bound)
        b = jax.random.uniform(kb, (1, d_out), jnp.float32, -bound, bound)
        params.append((w, b))
    return params


if __name__ == "__main__":
    # Model(nn_dim=[32, 64, 'relu', 16, 'relu', 8], ...) forward pass.
    nn_dim = [32, 64, "relu", 16, "relu", 8]
    dims, activations = parse_nn_dim(nn_dim)
    batch = 8

    key = jax.random.PRNGKey(0)
    key, kx = jax.random.split(key)
    x = jax.random.normal(kx, (batch, dims[0]), jnp.float32)
    params = init_params(key, dims)

    packed_params, bands, n_out = pack_params(params)
    out = model_forward(x, packed_params, bands=bands, activations=activations, n_out=n_out)
    out = jax.block_until_ready(out)

    # Sanity: shape, finiteness, exact softmax normalization, parity with plain JAX f32.
    assert out.shape == (batch, n_out), out.shape
    assert bool(jnp.all(jnp.isfinite(out)))
    assert bool(jnp.allclose(jnp.sum(out, axis=1), 1.0, atol=1e-3))
    ref = reference_forward(x, params, activations)
    err = float(jnp.max(jnp.abs(out - ref)))
    assert err < 2e-2, err

    print("KERNEL_OK")
</pallas_src>

<mosaic_0001>
module attributes {stable_mosaic.version = 11 : i64} {
  func.func @_mlp_softmax_kernel(%arg0: i32, %arg1: memref<16x512xbf16, #tpu.memory_space<vmem>>, %arg2: memref<128x256xbf16, #tpu.memory_space<vmem>>, %arg3: memref<1x1024xf32, #tpu.memory_space<vmem>>, %arg4: memref<512x128xbf16, #tpu.memory_space<vmem>>, %arg5: memref<1x256xf32, #tpu.memory_space<vmem>>, %arg6: memref<256x128xbf16, #tpu.memory_space<vmem>>, %arg7: memref<1x128xf32, #tpu.memory_space<vmem>>, %arg8: memref<16x128xf32, #tpu.memory_space<vmem>>) attributes {dimension_semantics = [#tpu.dimension_semantics<parallel>], iteration_bounds = array<i64: 1>, scalar_prefetch = 0 : i64, scratch_operands = 0 : i64, tpu.core_type = #tpu.core_type<tc>, window_params = [{transform_indices = @transform_0, window_bounds = array<i64: 16, 512>}, {pipeline_mode = #tpu.pipeline_mode<synchronous>, transform_indices = @transform_1, window_bounds = array<i64: 128, 256>}, {pipeline_mode = #tpu.pipeline_mode<synchronous>, transform_indices = @transform_2, window_bounds = array<i64: 1, 1024>}, {pipeline_mode = #tpu.pipeline_mode<synchronous>, transform_indices = @transform_3, window_bounds = array<i64: 512, 128>}, {pipeline_mode = #tpu.pipeline_mode<synchronous>, transform_indices = @transform_4, window_bounds = array<i64: 1, 256>}, {pipeline_mode = #tpu.pipeline_mode<synchronous>, transform_indices = @transform_5, window_bounds = array<i64: 256, 128>}, {pipeline_mode = #tpu.pipeline_mode<synchronous>, transform_indices = @transform_6, window_bounds = array<i64: 1, 128>}, {transform_indices = @transform_7, window_bounds = array<i64: 16, 128>}]} {
    %c0 = arith.constant 0 : index
    %c0_0 = arith.constant 0 : index
    %0 = vector.load %arg1[%c0, %c0_0] : memref<16x512xbf16, #tpu.memory_space<vmem>>, vector<16x512xbf16>
    %1 = vector.extract_strided_slice %0 {offsets = [0, 0], sizes = [16, 128], strides = [1, 1]} : vector<16x512xbf16> to vector<16x128xbf16>
    %c0_1 = arith.constant 0 : index
    %c0_2 = arith.constant 0 : index
    %2 = vector.load %arg2[%c0_1, %c0_2] : memref<128x256xbf16, #tpu.memory_space<vmem>>, vector<128x256xbf16>
    %cst = arith.constant dense<0.000000e+00> : vector<16x256xf32>
    %3 = tpu.matmul %1, %2, %cst {dimension_numbers = #tpu.dot_dimension_numbers<[1], [0], [0], [1], [0, 0, 1, 1], [], []>} : vector<16x128xbf16>, vector<128x256xbf16>, vector<16x256xf32> -> vector<16x256xf32>
    %4 = vector.extract_strided_slice %0 {offsets = [0, 128], sizes = [16, 128], strides = [1, 1]} : vector<16x512xbf16> to vector<16x128xbf16>
    %c0_3 = arith.constant 0 : index
    %c0_4 = arith.constant 0 : index
    %5 = vector.load %arg2[%c0_3, %c0_4] : memref<128x256xbf16, #tpu.memory_space<vmem>>, vector<128x256xbf16>
    %cst_5 = arith.constant dense<0.000000e+00> : vector<16x256xf32>
    %6 = tpu.matmul %4, %5, %cst_5 {dimension_numbers = #tpu.dot_dimension_numbers<[1], [0], [0], [1], [0, 0, 1, 1], [], []>} : vector<16x128xbf16>, vector<128x256xbf16>, vector<16x256xf32> -> vector<16x256xf32>
    %7 = vector.extract_strided_slice %0 {offsets = [0, 256], sizes = [16, 128], strides = [1, 1]} : vector<16x512xbf16> to vector<16x128xbf16>
    %c0_6 = arith.constant 0 : index
    %c0_7 = arith.constant 0 : index
    %8 = vector.load %arg2[%c0_6, %c0_7] : memref<128x256xbf16, #tpu.memory_space<vmem>>, vector<128x256xbf16>
    %cst_8 = arith.constant dense<0.000000e+00> : vector<16x256xf32>
    %9 = tpu.matmul %7, %8, %cst_8 {dimension_numbers = #tpu.dot_dimension_numbers<[1], [0], [0], [1], [0, 0, 1, 1], [], []>} : vector<16x128xbf16>, vector<128x256xbf16>, vector<16x256xf32> -> vector<16x256xf32>
    %10 = vector.extract_strided_slice %0 {offsets = [0, 384], sizes = [16, 128], strides = [1, 1]} : vector<16x512xbf16> to vector<16x128xbf16>
    %c0_9 = arith.constant 0 : index
    %c0_10 = arith.constant 0 : index
    %11 = vector.load %arg2[%c0_9, %c0_10] : memref<128x256xbf16, #tpu.memory_space<vmem>>, vector<128x256xbf16>
    %cst_11 = arith.constant dense<0.000000e+00> : vector<16x256xf32>
    %12 = tpu.matmul %10, %11, %cst_11 {dimension_numbers = #tpu.dot_dimension_numbers<[1], [0], [0], [1], [0, 0, 1, 1], [], []>} : vector<16x128xbf16>, vector<128x256xbf16>, vector<16x256xf32> -> vector<16x256xf32>
    %13 = tpu.concatenate %3, %6, %9, %12 in 1 : vector<16x256xf32>, vector<16x256xf32>, vector<16x256xf32>, vector<16x256xf32> -> vector<16x1024xf32>
    %c0_12 = arith.constant 0 : index
    %c0_13 = arith.constant 0 : index
    %14 = vector.load %arg3[%c0_12, %c0_13] : memref<1x1024xf32, #tpu.memory_space<vmem>>, vector<1x1024xf32>
    %15 = vector.broadcast %14 : vector<1x1024xf32> to vector<16x1024xf32>
    %16 = arith.addf %13, %15 : vector<16x1024xf32>
    %cst_14 = arith.constant 0.000000e+00 : f32
    %17 = vector.broadcast %cst_14 : f32 to vector<16x1024xf32>
    %18 = arith.maximumf %16, %17 : vector<16x1024xf32>
    %19 = vector.extract_strided_slice %18 {offsets = [0, 0], sizes = [16, 512], strides = [1, 1]} : vector<16x1024xf32> to vector<16x512xf32>
    %20 = arith.truncf %19 : vector<16x512xf32> to vector<16x512xbf16>
    %c0_15 = arith.constant 0 : index
    %c0_16 = arith.constant 0 : index
    %21 = vector.load %arg4[%c0_15, %c0_16] : memref<512x128xbf16, #tpu.memory_space<vmem>>, vector<512x128xbf16>
    %cst_17 = arith.constant dense<0.000000e+00> : vector<16x128xf32>
    %22 = tpu.matmul %20, %21, %cst_17 {dimension_numbers = #tpu.dot_dimension_numbers<[1], [0], [0], [1], [0, 0, 1, 1], [], []>} : vector<16x512xbf16>, vector<512x128xbf16>, vector<16x128xf32> -> vector<16x128xf32>
    %23 = vector.extract_strided_slice %18 {offsets = [0, 512], sizes = [16, 512], strides = [1, 1]} : vector<16x1024xf32> to vector<16x512xf32>
    %24 = arith.truncf %23 : vector<16x512xf32> to vector<16x512xbf16>
    %c0_18 = arith.constant 0 : index
    %c0_19 = arith.constant 0 : index
    %25 = vector.load %arg4[%c0_18, %c0_19] : memref<512x128xbf16, #tpu.memory_space<vmem>>, vector<512x128xbf16>
    %cst_20 = arith.constant dense<0.000000e+00> : vector<16x128xf32>
    %26 = tpu.matmul %24, %25, %cst_20 {dimension_numbers = #tpu.dot_dimension_numbers<[1], [0], [0], [1], [0, 0, 1, 1], [], []>} : vector<16x512xbf16>, vector<512x128xbf16>, vector<16x128xf32> -> vector<16x128xf32>
    %27 = tpu.concatenate %22, %26 in 1 : vector<16x128xf32>, vector<16x128xf32> -> vector<16x256xf32>
    %c0_21 = arith.constant 0 : index
    %c0_22 = arith.constant 0 : index
    %28 = vector.load %arg5[%c0_21, %c0_22] : memref<1x256xf32, #tpu.memory_space<vmem>>, vector<1x256xf32>
    %29 = vector.broadcast %28 : vector<1x256xf32> to vector<16x256xf32>
    %30 = arith.addf %27, %29 : vector<16x256xf32>
    %cst_23 = arith.constant 0.000000e+00 : f32
    %31 = vector.broadcast %cst_23 : f32 to vector<16x256xf32>
    %32 = arith.maximumf %30, %31 : vector<16x256xf32>
    %33 = arith.truncf %32 : vector<16x256xf32> to vector<16x256xbf16>
    %c0_24 = arith.constant 0 : index
    %c0_25 = arith.constant 0 : index
    %34 = vector.load %arg6[%c0_24, %c0_25] : memref<256x128xbf16, #tpu.memory_space<vmem>>, vector<256x128xbf16>
    %cst_26 = arith.constant dense<0.000000e+00> : vector<16x128xf32>
    %35 = tpu.matmul %33, %34, %cst_26 {dimension_numbers = #tpu.dot_dimension_numbers<[1], [0], [0], [1], [0, 0, 1, 1], [], []>} : vector<16x256xbf16>, vector<256x128xbf16>, vector<16x128xf32> -> vector<16x128xf32>
    %c0_27 = arith.constant 0 : index
    %c0_28 = arith.constant 0 : index
    %36 = vector.load %arg7[%c0_27, %c0_28] : memref<1x128xf32, #tpu.memory_space<vmem>>, vector<1x128xf32>
    %37 = vector.broadcast %36 : vector<1x128xf32> to vector<16x128xf32>
    %38 = arith.addf %35, %37 : vector<16x128xf32>
    %39 = tpu.iota {dimensions = array<i32: 1>} : vector<16x128xi32>
    %c8_i32 = arith.constant 8 : i32
    %c0_i32 = arith.constant 0 : i32
    %40 = arith.cmpi eq, %c8_i32, %c0_i32 : i32
    %c1_i32 = arith.constant 1 : i32
    %41 = arith.select %40, %c1_i32, %c8_i32 : i32
    %42 = vector.broadcast %41 : i32 to vector<16x128xi32>
    %43 = arith.remsi %39, %42 : vector<16x128xi32>
    %c0_i32_29 = arith.constant 0 : i32
    %44 = vector.broadcast %c0_i32_29 : i32 to vector<16x128xi32>
    %45 = arith.cmpi ne, %43, %44 : vector<16x128xi32>
    %c0_i32_30 = arith.constant 0 : i32
    %46 = vector.broadcast %c0_i32_30 : i32 to vector<16x128xi32>
    %47 = arith.cmpi slt, %43, %46 : vector<16x128xi32>
    %c0_i32_31 = arith.constant 0 : i32
    %48 = arith.cmpi slt, %41, %c0_i32_31 : i32
    %49 = vector.broadcast %48 : i1 to vector<16x128xi1>
    %50 = vector.broadcast %49 : vector<16x128xi1> to vector<16x128xi1>
    %51 = arith.xori %47, %50 : vector<16x128xi1>
    %52 = arith.andi %51, %45 : vector<16x128xi1>
    %53 = vector.broadcast %41 : i32 to vector<16x128xi32>
    %54 = arith.addi %43, %53 : vector<16x128xi32>
    %55 = arith.select %52, %54, %43 : vector<16x128xi1>, vector<16x128xi32>
    %c1_i32_32 = arith.constant 1 : i32
    %56 = tpu.dynamic_rotate %39 by %c1_i32_32 dim 1 : vector<16x128xi32>, i32 -> vector<16x128xi32>
    %57 = arith.subi %56, %39 : vector<16x128xi32>
    %c127_i32 = arith.constant 127 : i32
    %58 = vector.broadcast %c127_i32 : i32 to vector<16x128xi32>
    %59 = arith.andi %57, %58 : vector<16x128xi32>
    %c1_i32_33 = arith.constant 1 : i32
    %60 = vector.broadcast %c1_i32_33 : i32 to vector<16x128xi32>
    %61 = arith.cmpi eq, %59, %60 : vector<16x128xi32>
    %c1_i32_34 = arith.constant 1 : i32
    %62 = vector.broadcast %c1_i32_34 : i32 to vector<16x128xi32>
    %63 = arith.andi %55, %62 : vector<16x128xi32>
    %c0_i32_35 = arith.constant 0 : i32
    %64 = vector.broadcast %c0_i32_35 : i32 to vector<16x128xi32>
    %65 = arith.cmpi eq, %63, %64 : vector<16x128xi32>
    %c2_i32 = arith.constant 2 : i32
    %66 = vector.broadcast %c2_i32 : i32 to vector<16x128xi32>
    %67 = arith.andi %55, %66 : vector<16x128xi32>
    %c0_i32_36 = arith.constant 0 : i32
    %68 = vector.broadcast %c0_i32_36 : i32 to vector<16x128xi32>
    %69 = arith.cmpi eq, %67, %68 : vector<16x128xi32>
    %c4_i32 = arith.constant 4 : i32
    %70 = vector.broadcast %c4_i32 : i32 to vector<16x128xi32>
    %71 = arith.andi %55, %70 : vector<16x128xi32>
    %c0_i32_37 = arith.constant 0 : i32
    %72 = vector.broadcast %c0_i32_37 : i32 to vector<16x128xi32>
    %73 = arith.cmpi eq, %71, %72 : vector<16x128xi32>
    %c1_i32_38 = arith.constant 1 : i32
    %74 = tpu.dynamic_rotate %38 by %c1_i32_38 dim 1 : vector<16x128xf32>, i32 -> vector<16x128xf32>
    %c127_i32_39 = arith.constant 127 : i32
    %75 = tpu.dynamic_rotate %38 by %c127_i32_39 dim 1 : vector<16x128xf32>, i32 -> vector<16x128xf32>
    %76 = arith.xori %65, %61 : vector<16x128xi1>
    %cst_40 = arith.constant dense<true> : vector<16x128xi1>
    %77 = arith.xori %76, %cst_40 : vector<16x128xi1>
    %78 = arith.select %77, %74, %75 : vector<16x128xi1>, vector<16x128xf32>
    %79 = arith.maximumf %38, %78 : vector<16x128xf32>
    %c2_i32_41 = arith.constant 2 : i32
    %80 = tpu.dynamic_rotate %79 by %c2_i32_41 dim 1 : vector<16x128xf32>, i32 -> vector<16x128xf32>
    %c126_i32 = arith.constant 126 : i32
    %81 = tpu.dynamic_rotate %79 by %c126_i32 dim 1 : vector<16x128xf32>, i32 -> vector<16x128xf32>
    %82 = arith.xori %69, %61 : vector<16x128xi1>
    %cst_42 = arith.constant dense<true> : vector<16x128xi1>
    %83 = arith.xori %82, %cst_42 : vector<16x128xi1>
    %84 = arith.select %83, %80, %81 : vector<16x128xi1>, vector<16x128xf32>
    %85 = arith.maximumf %79, %84 : vector<16x128xf32>
    %c4_i32_43 = arith.constant 4 : i32
    %86 = tpu.dynamic_rotate %85 by %c4_i32_43 dim 1 : vector<16x128xf32>, i32 -> vector<16x128xf32>
    %c124_i32 = arith.constant 124 : i32
    %87 = tpu.dynamic_rotate %85 by %c124_i32 dim 1 : vector<16x128xf32>, i32 -> vector<16x128xf32>
    %88 = arith.xori %73, %61 : vector<16x128xi1>
    %cst_44 = arith.constant dense<true> : vector<16x128xi1>
    %89 = arith.xori %88, %cst_44 : vector<16x128xi1>
    %90 = arith.select %89, %86, %87 : vector<16x128xi1>, vector<16x128xf32>
    %91 = arith.maximumf %85, %90 : vector<16x128xf32>
    %92 = arith.subf %38, %91 : vector<16x128xf32>
    %93 = math.exp %92 : vector<16x128xf32>
    %c1_i32_45 = arith.constant 1 : i32
    %94 = tpu.dynamic_rotate %93 by %c1_i32_45 dim 1 : vector<16x128xf32>, i32 -> vector<16x128xf32>
    %c127_i32_46 = arith.constant 127 : i32
    %95 = tpu.dynamic_rotate %93 by %c127_i32_46 dim 1 : vector<16x128xf32>, i32 -> vector<16x128xf32>
    %96 = arith.xori %65, %61 : vector<16x128xi1>
    %cst_47 = arith.constant dense<true> : vector<16x128xi1>
    %97 = arith.xori %96, %cst_47 : vector<16x128xi1>
    %98 = arith.select %97, %94, %95 : vector<16x128xi1>, vector<16x128xf32>
    %99 = arith.addf %93, %98 : vector<16x128xf32>
    %c2_i32_48 = arith.constant 2 : i32
    %100 = tpu.dynamic_rotate %99 by %c2_i32_48 dim 1 : vector<16x128xf32>, i32 -> vector<16x128xf32>
    %c126_i32_49 = arith.constant 126 : i32
    %101 = tpu.dynamic_rotate %99 by %c126_i32_49 dim 1 : vector<16x128xf32>, i32 -> vector<16x128xf32>
    %102 = arith.xori %69, %61 : vector<16x128xi1>
    %cst_50 = arith.constant dense<true> : vector<16x128xi1>
    %103 = arith.xori %102, %cst_50 : vector<16x128xi1>
    %104 = arith.select %103, %100, %101 : vector<16x128xi1>, vector<16x128xf32>
    %105 = arith.addf %99, %104 : vector<16x128xf32>
    %c4_i32_51 = arith.constant 4 : i32
    %106 = tpu.dynamic_rotate %105 by %c4_i32_51 dim 1 : vector<16x128xf32>, i32 -> vector<16x128xf32>
    %c124_i32_52 = arith.constant 124 : i32
    %107 = tpu.dynamic_rotate %105 by %c124_i32_52 dim 1 : vector<16x128xf32>, i32 -> vector<16x128xf32>
    %108 = arith.xori %73, %61 : vector<16x128xi1>
    %cst_53 = arith.constant dense<true> : vector<16x128xi1>
    %109 = arith.xori %108, %cst_53 : vector<16x128xi1>
    %110 = arith.select %109, %106, %107 : vector<16x128xi1>, vector<16x128xf32>
    %111 = arith.addf %105, %110 : vector<16x128xf32>
    %112 = arith.divf %93, %111 : vector<16x128xf32>
    %c0_54 = arith.constant 0 : index
    %c0_55 = arith.constant 0 : index
    %113 = vector.load %arg8[%c0_54, %c0_55] : memref<16x128xf32, #tpu.memory_space<vmem>>, vector<16x128xf32>
    tpu.vector_store %arg8[%c0_54, %c0_55], %112 {strides = array<i32>} : memref<16x128xf32, #tpu.memory_space<vmem>>, vector<16x128xf32>,
    return
  }
  func.func @transform_0(%arg0: i32) -> (i32, i32) {
    %c0_i32 = arith.constant 0 : i32
    %c0_i32_0 = arith.constant 0 : i32
    return %arg0, %c0_i32 : i32, i32
  }
  func.func @transform_1(%arg0: i32) -> (i32, i32) {
    %c0_i32 = arith.constant 0 : i32
    %c0_i32_0 = arith.constant 0 : i32
    %c0_i32_1 = arith.constant 0 : i32
    return %c0_i32, %c0_i32_0 : i32, i32
  }
  func.func @transform_2(%arg0: i32) -> (i32, i32) {
    %c0_i32 = arith.constant 0 : i32
    %c0_i32_0 = arith.constant 0 : i32
    %c0_i32_1 = arith.constant 0 : i32
    return %c0_i32, %c0_i32_0 : i32, i32
  }
  func.func @transform_3(%arg0: i32) -> (i32, i32) {
    %c0_i32 = arith.constant 0 : i32
    %c0_i32_0 = arith.constant 0 : i32
    %c0_i32_1 = arith.constant 0 : i32
    return %c0_i32, %c0_i32_0 : i32, i32
  }
  func.func @transform_4(%arg0: i32) -> (i32, i32) {
    %c0_i32 = arith.constant 0 : i32
    %c0_i32_0 = arith.constant 0 : i32
    %c0_i32_1 = arith.constant 0 : i32
    return %c0_i32, %c0_i32_0 : i32, i32
  }
  func.func @transform_5(%arg0: i32) -> (i32, i32) {
    %c0_i32 = arith.constant 0 : i32
    %c0_i32_0 = arith.constant 0 : i32
    %c0_i32_1 = arith.constant 0 : i32
    return %c0_i32, %c0_i32_0 : i32, i32
  }
  func.func @transform_6(%arg0: i32) -> (i32, i32) {
    %c0_i32 = arith.constant 0 : i32
    %c0_i32_0 = arith.constant 0 : i32
    %c0_i32_1 = arith.constant 0 : i32
    return %c0_i32, %c0_i32_0 : i32, i32
  }
  func.func @transform_7(%arg0: i32) -> (i32, i32) {
    %c0_i32 = arith.constant 0 : i32
    %c0_i32_0 = arith.constant 0 : i32
    return %arg0, %c0_i32 : i32, i32
  }
}

</mosaic_0001>

<bundles_post_ra>
// kernel: model_forward.1
= control target key start
LH: loop header
LB: loop body
LE: loop exit
PB: predicated region body
PF: predicated region fallthrough
CT: control target
= control target key end

     0   :  { %12 = vsyncpa [#allocation3], 0  ;;  %s1813_s0 = inlined_call_operand.vmem [shape: bf16[16,512], index: 0, kind: input, shape index: {}]   ;;  %s1814_s1 = inlined_call_operand.hbm [shape: bf16[128,256], index: 1, kind: input, shape index: {}]   ;;  %s1815_s2 = inlined_call_operand.vmem [shape: f32[1,1024], index: 2, kind: input, shape index: {}]   ;;  %s1816_s3 = inlined_call_operand.vmem [shape: bf16[512,128], index: 3, kind: input, shape index: {}]   ;;  %s1817_s4 = inlined_call_operand.vmem [shape: f32[1,256], index: 4, kind: input, shape index: {}]   ;;  %s1818_s5 = inlined_call_operand.hbm [shape: bf16[256,128], index: 5, kind: input, shape index: {}]   ;;  %s1819_s6 = inlined_call_operand.vmem [shape: f32[1,128], index: 6, kind: input, shape index: {}]   ;;  %s1820_s7 = inlined_call_operand.vmem [shape: f32[16,128], index: 7, kind: output, shape index: {}]  }
   0x1   :  { %s20_s26 = sshll.u32 %s1814_s1, 4  ;;  %s21_s26 = int_to_ptr.hbm [resolvable:$true] %s20_s26 }
   0x2   :  { %13 = vsyncpa [#allocation5], 0  ;;  %s1452_s27 = smov [#allocation2]   ;;  %s39_s8 = sshll.u32 %s1818_s5, 4  ;;  %s40_s8 = int_to_ptr.hbm [resolvable:$true] %s39_s8 }
   0x3   :  { %s22_s28 = sshll.u32 %s1452_s27, 4  ;;  %s1453_s9 = smov 128   ;;  %s23_s28 = int_to_ptr.vmem [resolvable:$true] %s22_s28 }
   0x4   :  { %s1454_s10 = smov 8   ;;  %s1455_s11 = smov [#allocation4]  }
   0x5   :  { %28 = dma.hbm_to_vmem [thread:$0]  %s21_s26, 2048, %s23_s28, [#allocation3], %s1453_s9, %s1453_s9, %s1454_s10  }
   0x6   :  { %s41_s12 = sshll.u32 %s1455_s11, 4  ;;  %s1456_s13 = smov 64   ;;  %s42_s12 = int_to_ptr.vmem [resolvable:$true] %s41_s12 }
   0x7   :  { %s1457_s14 = smov 4  }
   0x8   :  { %47 = dma.hbm_to_vmem [thread:$0]  %s40_s8, 2048, %s42_s12, [#allocation5], %s1456_s13, %s1456_s13, %s1457_s14  }
   0x9   :  { %1448 = dma.done.wait [#allocation3], 2048  }
   0xa   :  { %1449 = vsyncadd [#allocation3], 4294965248 }
   0xb   :  { %1450 = dma.done.wait [#allocation5], 2048  }
   0xc   :  { %1451 = vsyncadd [#allocation5], 4294965248  ;;  %v1101_v0 = vld [vmem:[#allocation2 + $0x70] sm:$0xf]  ;;  %v1330_v1 = vld [vmem:[#allocation2 + $0x74] sm:$0xf0] }
   0xd   :  { %v1329_v2 = vld [vmem:[#allocation2 + $0x74] sm:$0xf]  ;;  %v1511_v3 = vor.u32 %v1330_v1, %v1101_v0  ;;  %v1103_v4 = vld [vmem:[#allocation2 + $0x78] sm:$0xf0]  ;;  %v1093_v5 = vld [vmem:[#allocation2 + $0x60] sm:$0xf] }
   0xe   :  { %v1328_v6 = vld [vmem:[#allocation2 + $0x64] sm:$0xf0]  ;;  %v1513_v7 = vor.u32 %v1329_v2, %v1103_v4  ;;  %v1327_v8 = vld [vmem:[#allocation2 + $0x64] sm:$0xf]  ;;  %v1095_v9 = vld [vmem:[#allocation2 + $0x68] sm:$0xf0] }
   0xf   :  { %164 = vmatpush.bf16.msra.mxu0 %v1511_v3  ;;  %196 = vmatpush.bf16.msra.mxu2 %v1511_v3  ;;  %v1517_v10 = vor.u32 %v1328_v6, %v1093_v5  ;;  %v1521_v11 = vor.u32 %v1327_v8, %v1095_v9  ;;  %v1085_v12 = vld [vmem:[#allocation2 + $0x50] sm:$0xf]  ;;  %v1326_v13 = vld [vmem:[#allocation2 + $0x54] sm:$0xf0]  ;;  %v1325_v14 = vld [vmem:[#allocation2 + $0x54] sm:$0xf] }
  0x10   :  { %178 = vmatpush.bf16.msra.mxu1 %v1513_v7  ;;  %210 = vmatpush.bf16.msra.mxu3 %v1513_v7  ;;  %v1087_v15 = vld [vmem:[#allocation2 + $0x58] sm:$0xf0]  ;;  %v1525_v16 = vor.u32 %v1326_v13, %v1085_v12  ;;  %v1077_v18 = vld [vmem:[#allocation2 + $0x40] sm:$0xf]  ;;  %v1324_v19 = vld [vmem:[#allocation2 + $0x44] sm:$0xf0] }
  0x11   :  { %v1529_v17 = vor.u32 %v1325_v14, %v1087_v15  ;;  %v1323_v20 = vld [vmem:[#allocation2 + $0x44] sm:$0xf]  ;;  %v1079_v21 = vld [vmem:[#allocation2 + $0x48] sm:$0xf0]  ;;  %v1533_v22 = vor.u32 %v1324_v19, %v1077_v18  ;;  %v1069_v24 = vld [vmem:[#allocation2 + $0x30] sm:$0xf] }
  0x12   :  { %v1537_v23 = vor.u32 %v1323_v20, %v1079_v21  ;;  %v1322_v25 = vld [vmem:[#allocation2 + $0x34] sm:$0xf0]  ;;  %v1321_v26 = vld [vmem:[#allocation2 + $0x34] sm:$0xf]  ;;  %v1071_v27 = vld [vmem:[#allocation2 + $0x38] sm:$0xf0] }
  0x13   :  { %165 = vmatpush.bf16.msra.mxu0 %v1517_v10  ;;  %197 = vmatpush.bf16.msra.mxu2 %v1517_v10  ;;  %v1541_v28 = vor.u32 %v1322_v25, %v1069_v24  ;;  %v1545_v29 = vor.u32 %v1321_v26, %v1071_v27  ;;  %v1061_v30 = vld [vmem:[#allocation2 + $0x20] sm:$0xf]  ;;  %v1320_v31 = vld [vmem:[#allocation2 + $0x24] sm:$0xf0]  ;;  %v1319_v32 = vld [vmem:[#allocation2 + $0x24] sm:$0xf] }
  0x14   :  { %179 = vmatpush.bf16.msra.mxu1 %v1521_v11  ;;  %211 = vmatpush.bf16.msra.mxu3 %v1521_v11  ;;  %v1063_v33 = vld [vmem:[#allocation2 + $0x28] sm:$0xf0]  ;;  %v1062_v34 = vor.u32 %v1320_v31, %v1061_v30  ;;  %v1053_v36 = vld [vmem:[#allocation2 + $0x10] sm:$0xf]  ;;  %v1318_v37 = vld [vmem:[#allocation2 + $0x14] sm:$0xf0] }
  0x15   :  { %v1066_v35 = vor.u32 %v1319_v32, %v1063_v33  ;;  %v1317_v38 = vld [vmem:[#allocation2 + $0x14] sm:$0xf]  ;;  %v1055_v39 = vld [vmem:[#allocation2 + $0x18] sm:$0xf0]  ;;  %v1054_v40 = vor.u32 %v1318_v37, %v1053_v36  ;;  %v1045_v42 = vld [vmem:[#allocation2] sm:$0xf] }
  0x16   :  { %v1058_v41 = vor.u32 %v1317_v38, %v1055_v39  ;;  %v1316_v43 = vld [vmem:[#allocation2 + $0x4] sm:$0xf0]  ;;  %v1315_v44 = vld [vmem:[#allocation2 + $0x4] sm:$0xf]  ;;  %v1047_v45 = vld [vmem:[#allocation2 + $0x8] sm:$0xf0] }
  0x17   :  { %166 = vmatpush.bf16.msra.mxu0 %v1525_v16  ;;  %198 = vmatpush.bf16.msra.mxu2 %v1525_v16  ;;  %v1046_v46 = vor.u32 %v1316_v43, %v1045_v42  ;;  %v1050_v47 = vor.u32 %v1315_v44, %v1047_v45  ;;  %v1311_v48 = vld [vmem:[%s1813_s0 + $0x4] sm:$0xf]  ;;  %v1107_v49 = vld [vmem:[%s1813_s0 + $0x10] sm:$0xf0]  ;;  %v1041_v50 = vld [vmem:[%s1813_s0] sm:$0xf] }
  0x18   :  { %180 = vmatpush.bf16.msra.mxu1 %v1529_v17  ;;  %212 = vmatpush.bf16.msra.mxu3 %v1529_v17  ;;  %v1313_v51 = vld [vmem:[%s1813_s0 + $0xc] sm:$0xf0]  ;;  %v1110_v52 = vor.u32 %v1311_v48, %v1107_v49  ;;  %v1113_v54 = vld [vmem:[%s1813_s0 + $0x8] sm:$0xf]  ;;  %v1314_v55 = vld [vmem:[%s1813_s0 + $0x14] sm:$0xf0] }
  0x19   :  { %v1042_v53 = vor.u32 %v1313_v51, %v1041_v50  ;;  %v1312_v56 = vld [vmem:[%s1813_s0 + $0xc] sm:$0xf]  ;;  %v1115_v57 = vld [vmem:[%s1813_s0 + $0x18] sm:$0xf0]  ;;  %v1114_v60 = vor.u32 %v1314_v55, %v1113_v54  ;;  %v1337_v0 = vld [vmem:[%s1816_s3 + $0x30] sm:$0xff]  ;;  %s1459_s22 = smov 127  }
  0x1a   :  { %v1598_v58 = vld [vmem:[%s1816_s3 + $0x38] sm:$0xff]  ;;  %v1118_v61 = vor.u32 %v1312_v56, %v1115_v57  ;;  %v1345_v1 = vld [vmem:[%s1816_s3 + $0x70] sm:$0xff]  ;;  %v1336_v4 = vld [vmem:[%s1816_s3 + $0x28] sm:$0xff]  ;;  %vm1460_vm4 = vmmov 1   ;;  %s1462_s23 = smov 126   ;;  %s1463_s24 = smov 124  }
  0x1b   :  { %167 = vmatpush.bf16.msra.mxu0 %v1533_v22  ;;  %199 = vmatpush.bf16.msra.mxu2 %v1533_v22  ;;  %v1603_v59 = vld [vmem:[%s1816_s3 + $0x78] sm:$0xff]  ;;  %v1353_v2 = vld [vmem:[%s1816_s3 + $0xb0] sm:$0xff]  ;;  %v1344_v5 = vld [vmem:[%s1816_s3 + $0x68] sm:$0xff] }
  0x1c   :  { %181 = vmatpush.bf16.msra.mxu1 %v1537_v23  ;;  %213 = vmatpush.bf16.msra.mxu3 %v1537_v23  ;;  %v1608_v62 = vld [vmem:[%s1816_s3 + $0xb8] sm:$0xff]  ;;  %v1352_v6 = vld [vmem:[%s1816_s3 + $0xa8] sm:$0xff]  ;;  %v1335_v8 = vld [vmem:[%s1816_s3 + $0x20] sm:$0xff] }
  0x1d   :  { %v1613_v63 = vld [vmem:[%s1816_s3 + $0xf8] sm:$0xff]  ;;  %v1343_v9 = vld [vmem:[%s1816_s3 + $0x60] sm:$0xff]  ;;  %v1333_v14 = vld [vmem:[%s1816_s3 + $0x10] sm:$0xff] }
  0x1e   :  { %v1334_v12 = vld [vmem:[%s1816_s3 + $0x18] sm:$0xff]  ;;  %v1341_v15 = vld [vmem:[%s1816_s3 + $0x50] sm:$0xff]  ;;  %v1332_v18 = vld [vmem:[%s1816_s3 + $0x8] sm:$0xff] }
  0x1f   :  { %168 = vmatpush.bf16.msra.mxu0 %v1541_v28  ;;  %200 = vmatpush.bf16.msra.mxu2 %v1541_v28  ;;  %v1342_v13 = vld [vmem:[%s1816_s3 + $0x58] sm:$0xff]  ;;  %v1340_v19 = vld [vmem:[%s1816_s3 + $0x48] sm:$0xff]  ;;  %v1349_v20 = vld [vmem:[%s1816_s3 + $0x90] sm:$0xff] }
  0x20   :  { %182 = vmatpush.bf16.msra.mxu1 %v1545_v29  ;;  %214 = vmatpush.bf16.msra.mxu3 %v1545_v29  ;;  %v1357_v21 = vld [vmem:[%s1816_s3 + $0xd0] sm:$0xff]  ;;  %v1348_v24 = vld [vmem:[%s1816_s3 + $0x88] sm:$0xff]  ;;  %v1702_v26 = vld [vmem:[%s1816_s3 + $0x80] sm:$0xff] }
  0x21   :  { %v1356_v25 = vld [vmem:[%s1816_s3 + $0xc8] sm:$0xff]  ;;  %v1707_v27 = vld [vmem:[%s1816_s3 + $0xc0] sm:$0xff] }
  0x23   :  { %169 = vmatpush.bf16.msra.mxu0 %v1062_v34  ;;  %201 = vmatpush.bf16.msra.mxu2 %v1062_v34 }
  0x24   :  { %183 = vmatpush.bf16.msra.mxu1 %v1066_v35  ;;  %215 = vmatpush.bf16.msra.mxu3 %v1066_v35 }
  0x27   :  { %170 = vmatpush.bf16.msra.mxu0 %v1054_v40  ;;  %202 = vmatpush.bf16.msra.mxu2 %v1054_v40 }
  0x28   :  { %184 = vmatpush.bf16.msra.mxu1 %v1058_v41  ;;  %216 = vmatpush.bf16.msra.mxu3 %v1058_v41 }
  0x2b   :  { %171 = vmatpush.bf16.msra.mxu0 %v1046_v46  ;;  %203 = vmatpush.bf16.msra.mxu2 %v1046_v46 }
  0x2c   :  { %185 = vmatpush.bf16.msra.mxu1 %v1050_v47  ;;  %217 = vmatpush.bf16.msra.mxu3 %v1050_v47 }
  0x2e   :  { %204 = vmatmul.bf16.vlgmr.msra.gmra.mxu2 %v1110_v52  ;;  %172 = vmatmul.bf16.vlgmr.msra.gmra.mxu0 %v1042_v53 }
  0x2f   :  { %230 = vmatpush.bf16.msrb.mxu0 %v1511_v3  ;;  %262 = vmatpush.bf16.msrb.mxu2 %v1511_v3  ;;  %v1361_v3 = vld [vmem:[%s1816_s3 + $0xf0] sm:$0xff] }
  0x30   :  { %244 = vmatpush.bf16.msrb.mxu1 %v1513_v7  ;;  %276 = vmatpush.bf16.msrb.mxu3 %v1513_v7  ;;  %v1360_v7 = vld [vmem:[%s1816_s3 + $0xe8] sm:$0xff] }
  0x31   :  { %218 = vmatmul.bf16.vlgmr.msra.gmra.mxu3 %v1110_v52  ;;  %186 = vmatmul.bf16.vlgmr.msra.gmra.mxu1 %v1042_v53 }
  0x33   :  { %231 = vmatpush.bf16.msrb.mxu0 %v1517_v10  ;;  %263 = vmatpush.bf16.msrb.mxu2 %v1517_v10  ;;  %v1351_v10 = vld [vmem:[%s1816_s3 + $0xa0] sm:$0xff] }
  0x34   :  { %245 = vmatpush.bf16.msrb.mxu1 %v1521_v11  ;;  %277 = vmatpush.bf16.msrb.mxu3 %v1521_v11  ;;  %v1359_v11 = vld [vmem:[%s1816_s3 + $0xe0] sm:$0xff] }
  0x37   :  { %232 = vmatpush.bf16.msrb.mxu0 %v1525_v16  ;;  %264 = vmatpush.bf16.msrb.mxu2 %v1525_v16  ;;  %v1350_v16 = vld [vmem:[%s1816_s3 + $0x98] sm:$0xff] }
  0x38   :  { %246 = vmatpush.bf16.msrb.mxu1 %v1529_v17  ;;  %278 = vmatpush.bf16.msrb.mxu3 %v1529_v17  ;;  %v1358_v17 = vld [vmem:[%s1816_s3 + $0xd8] sm:$0xff] }
  0x3b   :  { %233 = vmatpush.bf16.msrb.mxu0 %v1533_v22  ;;  %265 = vmatpush.bf16.msrb.mxu2 %v1533_v22  ;;  %v1331_v22 = vld [vmem:[%s1816_s3] sm:$0xff] }
  0x3c   :  { %247 = vmatpush.bf16.msrb.mxu1 %v1537_v23  ;;  %279 = vmatpush.bf16.msrb.mxu3 %v1537_v23  ;;  %v1339_v23 = vld [vmem:[%s1816_s3 + $0x40] sm:$0xff] }
  0x3f   :  { %234 = vmatpush.bf16.msrb.mxu0 %v1541_v28  ;;  %266 = vmatpush.bf16.msrb.mxu2 %v1541_v28  ;;  %v1716_v28 = vld [vmem:[%s1815_s2] sm:$0xff] }
  0x40   :  { %248 = vmatpush.bf16.msrb.mxu1 %v1545_v29  ;;  %280 = vmatpush.bf16.msrb.mxu3 %v1545_v29  ;;  %v292_v31 = vperm.slane %v1716_v28, 0  ;;  %v293_v32 = vperm.slane %v1716_v28, 1  ;;  %v294_v37 = vperm.slane %v1716_v28, 2  ;;  %v295_v38 = vperm.slane %v1716_v28, 3 }
  0x43   :  { %235 = vmatpush.bf16.msrb.mxu0 %v1062_v34  ;;  %267 = vmatpush.bf16.msrb.mxu2 %v1062_v34 }
  0x44   :  { %249 = vmatpush.bf16.msrb.mxu1 %v1066_v35  ;;  %281 = vmatpush.bf16.msrb.mxu3 %v1066_v35 }
  0x47   :  { %236 = vmatpush.bf16.msrb.mxu0 %v1054_v40  ;;  %268 = vmatpush.bf16.msrb.mxu2 %v1054_v40 }
  0x48   :  { %250 = vmatpush.bf16.msrb.mxu1 %v1058_v41  ;;  %282 = vmatpush.bf16.msrb.mxu3 %v1058_v41 }
  0x4b   :  { %237 = vmatpush.bf16.msrb.mxu0 %v1046_v46  ;;  %269 = vmatpush.bf16.msrb.mxu2 %v1046_v46 }
  0x4c   :  { %251 = vmatpush.bf16.msrb.mxu1 %v1050_v47  ;;  %283 = vmatpush.bf16.msrb.mxu3 %v1050_v47 }
  0x4e   :  { %238 = vmatmul.bf16.vlgmr.msrb.gmra.mxu0 %v1114_v60  ;;  %270 = vmatmul.bf16.vlgmr.msrb.gmra.mxu2 %v1118_v61 }
  0x4f   :  { %600 = vmatpush.bf16.msra.mxu0 %v1598_v58  ;;  %252 = vmatmul.bf16.vlgmr.msrb.gmra.mxu1 %v1114_v60 }
  0x50   :  { %614 = vmatpush.bf16.msra.mxu1 %v1603_v59  ;;  %284 = vmatmul.bf16.vlgmr.msrb.gmra.mxu3 %v1118_v61  ;;  %v1370_v61 = vld [vmem:[#allocation4 + $0x38] sm:$0xff] }
  0x51   :  { %628 = vmatpush.bf16.msra.mxu2 %v1608_v62  ;;  %642 = vmatpush.bf16.msra.mxu3 %v1613_v63 }
  0x53   :  { %601 = vmatpush.bf16.msra.mxu0 %v1337_v0 }
  0x54   :  { %615 = vmatpush.bf16.msra.mxu1 %v1345_v1 }
  0x55   :  { %629 = vmatpush.bf16.msra.mxu2 %v1353_v2  ;;  %643 = vmatpush.bf16.msra.mxu3 %v1361_v3 }
  0x57   :  { %602 = vmatpush.bf16.msra.mxu0 %v1336_v4 }
  0x58   :  { %616 = vmatpush.bf16.msra.mxu1 %v1344_v5 }
  0x59   :  { %630 = vmatpush.bf16.msra.mxu2 %v1352_v6  ;;  %644 = vmatpush.bf16.msra.mxu3 %v1360_v7 }
  0x5b   :  { %603 = vmatpush.bf16.msra.mxu0 %v1335_v8 }
  0x5c   :  { %617 = vmatpush.bf16.msra.mxu1 %v1343_v9 }
  0x5d   :  { %631 = vmatpush.bf16.msra.mxu2 %v1351_v10  ;;  %645 = vmatpush.bf16.msra.mxu3 %v1359_v11 }
  0x5f   :  { %604 = vmatpush.bf16.msra.mxu0 %v1334_v12 }
  0x60   :  { %618 = vmatpush.bf16.msra.mxu1 %v1342_v13 }
  0x61   :  { %632 = vmatpush.bf16.msra.mxu2 %v1350_v16  ;;  %646 = vmatpush.bf16.msra.mxu3 %v1358_v17 }
  0x63   :  { %605 = vmatpush.bf16.msra.mxu0 %v1333_v14 }
  0x64   :  { %619 = vmatpush.bf16.msra.mxu1 %v1341_v15 }
  0x65   :  { %633 = vmatpush.bf16.msra.mxu2 %v1349_v20  ;;  %647 = vmatpush.bf16.msra.mxu3 %v1357_v21 }
  0x67   :  { %606 = vmatpush.bf16.msra.mxu0 %v1332_v18 }
  0x68   :  { %620 = vmatpush.bf16.msra.mxu1 %v1340_v19 }
  0x69   :  { %634 = vmatpush.bf16.msra.mxu2 %v1348_v24  ;;  %648 = vmatpush.bf16.msra.mxu3 %v1356_v25 }
  0x6b   :  { %607 = vmatpush.bf16.msra.mxu0 %v1331_v22 }
  0x6c   :  { %621 = vmatpush.bf16.msra.mxu1 %v1339_v23 }
  0x6d   :  { %635 = vmatpush.bf16.msra.mxu2 %v1702_v26  ;;  %649 = vmatpush.bf16.msra.mxu3 %v1707_v27 }
  0x6f   :  { %660 = vmatpush.bf16.msrb.mxu0 %v1598_v58 }
  0x70   :  { %674 = vmatpush.bf16.msrb.mxu1 %v1603_v59 }
  0x71   :  { %688 = vmatpush.bf16.msrb.mxu2 %v1608_v62  ;;  %702 = vmatpush.bf16.msrb.mxu3 %v1613_v63  ;;  %v1369_v62 = vld [vmem:[#allocation4 + $0x30] sm:$0xff] }
  0x73   :  { %661 = vmatpush.bf16.msrb.mxu0 %v1337_v0 }
  0x74   :  { %675 = vmatpush.bf16.msrb.mxu1 %v1345_v1  ;;  %v296_v1 = vperm.slane %v1716_v28, 4 }
  0x75   :  { %689 = vmatpush.bf16.msrb.mxu2 %v1353_v2  ;;  %703 = vmatpush.bf16.msrb.mxu3 %v1361_v3  ;;  %v297_v2 = vperm.slane %v1716_v28, 5 }
  0x77   :  { %662 = vmatpush.bf16.msrb.mxu0 %v1336_v4 }
  0x78   :  { %676 = vmatpush.bf16.msrb.mxu1 %v1344_v5 }
  0x79   :  { %690 = vmatpush.bf16.msrb.mxu2 %v1352_v6  ;;  %704 = vmatpush.bf16.msrb.mxu3 %v1360_v7 }
  0x7b   :  { %663 = vmatpush.bf16.msrb.mxu0 %v1335_v8 }
  0x7c   :  { %677 = vmatpush.bf16.msrb.mxu1 %v1343_v9 }
  0x7d   :  { %691 = vmatpush.bf16.msrb.mxu2 %v1351_v10  ;;  %705 = vmatpush.bf16.msrb.mxu3 %v1359_v11 }
  0x7f   :  { %664 = vmatpush.bf16.msrb.mxu0 %v1334_v12 }
  0x80   :  { %678 = vmatpush.bf16.msrb.mxu1 %v1342_v13  ;;  %v298_v13 = vperm.slane %v1716_v28, 6 }
  0x81   :  { %692 = vmatpush.bf16.msrb.mxu2 %v1350_v16  ;;  %706 = vmatpush.bf16.msrb.mxu3 %v1358_v17 }
  0x83   :  { %665 = vmatpush.bf16.msrb.mxu0 %v1333_v14  ;;  %v299_v14 = vperm.slane %v1716_v28, 7  ;;  %v1368_v28 = vld [vmem:[#allocation4 + $0x28] sm:$0xff] }
  0x84   :  { %679 = vmatpush.bf16.msrb.mxu1 %v1341_v15 }
  0x85   :  { %693 = vmatpush.bf16.msrb.mxu2 %v1349_v20  ;;  %707 = vmatpush.bf16.msrb.mxu3 %v1357_v21 }
  0x87   :  { %666 = vmatpush.bf16.msrb.mxu0 %v1332_v18 }
  0x88   :  { %680 = vmatpush.bf16.msrb.mxu1 %v1340_v19 }
  0x89   :  { %694 = vmatpush.bf16.msrb.mxu2 %v1348_v24  ;;  %708 = vmatpush.bf16.msrb.mxu3 %v1356_v25 }
  0x8b   :  { %667 = vmatpush.bf16.msrb.mxu0 %v1331_v22 }
  0x8c   :  { %681 = vmatpush.bf16.msrb.mxu1 %v1339_v23 }
  0x8d   :  { %695 = vmatpush.bf16.msrb.mxu2 %v1702_v26  ;;  %709 = vmatpush.bf16.msrb.mxu3 %v1707_v27 }
  0xab   :  { %v173_v29 = vpop.f32.mrf.mxu0 }
  0xac   :  { %v308_v35 = vadd.f32 %v292_v31, %v173_v29 }
  0xae   :  { %v187_v30 = vpop.f32.mrf.mxu1  ;;  %v324_v41 = vmax.f32 %v308_v35, 0.0  ;;  %v1364_v35 = vld [vmem:[#allocation4 + $0x8] sm:$0xff] }
  0xaf   :  { %v309_v36 = vadd.f32 %v293_v32, %v187_v30 }
  0xb1   :  { %v205_v33 = vpop.f32.mrf.mxu2  ;;  %v325_v42 = vmax.f32 %v309_v36, 0.0  ;;  %v1363_v36 = vld [vmem:[#allocation4] sm:$0xff] }
  0xb2   :  { %v310_v45 = vadd.f32 %v294_v37, %v205_v33  ;;  %v1366_v33 = vld [vmem:[#allocation4 + $0x18] sm:$0xff] }
  0xb3   :  { %v175_v39 = vpop.f32.mrf.mxu0 }
  0xb4   :  { %v219_v34 = vpop.f32.mrf.mxu3  ;;  %v316_v43 = vadd.f32 %v292_v31, %v175_v39  ;;  %v326_v53 = vmax.f32 %v310_v45, 0.0  ;;  %v1376_v39 = vld [vmem:[#allocation4 + $0x68] sm:$0xff] }
  0xb5   :  { %v311_v46 = vadd.f32 %v295_v38, %v219_v34  ;;  %v1365_v34 = vld [vmem:[#allocation4 + $0x10] sm:$0xff] }
  0xb6   :  { %v189_v40 = vpop.f32.mrf.mxu1  ;;  %v332_v47 = vmax.f32 %v316_v43, 0.0 }
  0xb7   :  { %v317_v44 = vadd.f32 %v293_v32, %v189_v40  ;;  %v327_v54 = vmax.f32 %v311_v46, 0.0  ;;  %v1367_v32 = vld [vmem:[#allocation4 + $0x20] sm:$0xff]  ;;  %v1374_v46 = vld [vmem:[#allocation4 + $0x58] sm:$0xff] }
  0xb8   :  { %v340_v51 = vpack.c.bf16 %v332_v47, %v324_v41 }
  0xb9   :  { %v333_v48 = vmax.f32 %v317_v44, 0.0  ;;  %v207_v49 = vpop.f32.mrf.mxu2 }
  0xba   :  { %v318_v55 = vadd.f32 %v294_v37, %v207_v49  ;;  %608 = vmatmul.bf16.vlgmr.msra.gmra.mxu0 %v340_v51  ;;  %v1378_v37 = vld [vmem:[#allocation4 + $0x78] sm:$0xff]  ;;  %v1373_v51 = vld [vmem:[#allocation4 + $0x50] sm:$0xff] }
  0xbb   :  { %v341_v52 = vpack.c.bf16 %v333_v48, %v325_v42  ;;  %864 = vmatpush.bf16.msra.mxu0 %v1370_v61  ;;  %v1375_v42 = vld [vmem:[#allocation4 + $0x60] sm:$0xff] }
  0xbc   :  { %v221_v50 = vpop.f32.mrf.mxu3  ;;  %v334_v57 = vmax.f32 %v318_v55, 0.0  ;;  %v716_v48 = vld [vmem:[%s1817_s4] sm:$0x3]  ;;  %s1458_s4 = smov 1  }
  0xbd   :  { %v319_v56 = vadd.f32 %v295_v38, %v221_v50  ;;  %622 = vmatmul.bf16.vlgmr.msra.gmra.mxu1 %v341_v52  ;;  %v1377_v38 = vld [vmem:[#allocation4 + $0x70] sm:$0xff]  ;;  %v1371_v61 = vld [vmem:[#allocation4 + $0x40] sm:$0xff] }
  0xbe   :  { %v342_v59 = vpack.c.bf16 %v334_v57, %v326_v53  ;;  %878 = vmatpush.bf16.msra.mxu1 %v1378_v37  ;;  %v718_v53 = vperm.slane %v716_v48, 0 }
  0xbf   :  { %v335_v58 = vmax.f32 %v319_v56, 0.0  ;;  %865 = vmatpush.bf16.msra.mxu0 %v1369_v62  ;;  %v1372_v56 = vld [vmem:[#allocation4 + $0x48] sm:$0xff] }
  0xc0   :  { %636 = vmatmul.bf16.vlgmr.msra.gmra.mxu2 %v342_v59 }
  0xc1   :  { %v343_v60 = vpack.c.bf16 %v335_v58, %v327_v54 }
  0xc2   :  { %879 = vmatpush.bf16.msra.mxu1 %v1377_v38 }
  0xc3   :  { %650 = vmatmul.bf16.vlgmr.msra.gmra.mxu3 %v343_v60  ;;  %866 = vmatpush.bf16.msra.mxu0 %v1368_v28 }
  0xc6   :  { %880 = vmatpush.bf16.msra.mxu1 %v1376_v39 }
  0xc7   :  { %867 = vmatpush.bf16.msra.mxu0 %v1367_v32 }
  0xca   :  { %881 = vmatpush.bf16.msra.mxu1 %v1375_v42 }
  0xcb   :  { %v239_v63 = vpop.f32.mrf.mxu0  ;;  %868 = vmatpush.bf16.msra.mxu0 %v1366_v33 }
  0xcc   :  { %v253_v0 = vpop.f32.mrf.mxu1  ;;  %v312_v3 = vadd.f32 %v296_v1, %v239_v63 }
  0xcd   :  { %v313_v4 = vadd.f32 %v297_v2, %v253_v0 }
  0xce   :  { %v328_v9 = vmax.f32 %v312_v3, 0.0  ;;  %882 = vmatpush.bf16.msra.mxu1 %v1374_v46 }
  0xcf   :  { %v329_v10 = vmax.f32 %v313_v4, 0.0  ;;  %869 = vmatpush.bf16.msra.mxu0 %v1365_v34 }
  0xd1   :  { %v271_v5 = vpop.f32.mrf.mxu2 }
  0xd2   :  { %v314_v19 = vadd.f32 %v298_v13, %v271_v5  ;;  %883 = vmatpush.bf16.msra.mxu1 %v1373_v51 }
  0xd3   :  { %v285_v6 = vpop.f32.mrf.mxu3  ;;  %v241_v7 = vpop.f32.mrf.mxu0  ;;  %870 = vmatpush.bf16.msra.mxu0 %v1364_v35 }
  0xd4   :  { %v255_v8 = vpop.f32.mrf.mxu1  ;;  %v320_v11 = vadd.f32 %v296_v1, %v241_v7  ;;  %v315_v20 = vadd.f32 %v299_v14, %v285_v6  ;;  %v330_v25 = vmax.f32 %v314_v19, 0.0 }
  0xd5   :  { %v321_v12 = vadd.f32 %v297_v2, %v255_v8 }
  0xd6   :  { %v336_v15 = vmax.f32 %v320_v11, 0.0  ;;  %v331_v26 = vmax.f32 %v315_v20, 0.0  ;;  %884 = vmatpush.bf16.msra.mxu1 %v1372_v56 }
  0xd7   :  { %v337_v16 = vmax.f32 %v321_v12, 0.0  ;;  %871 = vmatpush.bf16.msra.mxu0 %v1363_v36  ;;  %v719_v12 = vperm.slane %v716_v48, 1 }
  0xd8   :  { %v656_v17 = vpack.c.bf16 %v336_v15, %v328_v9 }
  0xd9   :  { %v657_v18 = vpack.c.bf16 %v337_v16, %v329_v10  ;;  %v273_v21 = vpop.f32.mrf.mxu2 }
  0xda   :  { %668 = vmatmul.bf16.vlgmr.msrb.gmra.mxu0 %v656_v17  ;;  %v322_v23 = vadd.f32 %v298_v13, %v273_v21  ;;  %885 = vmatpush.bf16.msra.mxu1 %v1371_v61 }
  0xdb   :  { %v287_v22 = vpop.f32.mrf.mxu3  ;;  %682 = vmatmul.bf16.vlgmr.msrb.gmra.mxu1 %v657_v18 }
  0xdc   :  { %v323_v24 = vadd.f32 %v299_v14, %v287_v22  ;;  %v338_v27 = vmax.f32 %v322_v23, 0.0  ;;  %v892_v22 = vlaneseq }
  0xde   :  { %v339_v29 = vmax.f32 %v323_v24, 0.0  ;;  %v658_v30 = vpack.c.bf16 %v338_v27, %v330_v25  ;;  %v893_v23 = vand.u32 127, %v892_v22  ;;  %v1391_v25 = vld [vmem:[%s1819_s6] ss:$0 sm:$0xff]  ;;  %s1461_s6 = smov 2  }
  0xe0   :  { %v659_v31 = vpack.c.bf16 %v339_v29, %v331_v26  ;;  %696 = vmatmul.bf16.vlgmr.msrb.gmra.mxu2 %v658_v30  ;;  %906 = vrot.lane.b32.xlu0 %v893_v23, %s1458_s4  ;;  %v898_v33 = vand.u32 7, %v893_v23 }
  0xe2   :  { %710 = vmatmul.bf16.vlgmr.msrb.gmra.mxu3 %v659_v31  ;;  %v913_v36 = vand.u32 2, %v898_v33  ;;  %v915_v38 = vand.u32 4, %v898_v33 }
  0xe4   :  { %vm914_vm0 = vcmp.eq.s32.totalorder %v913_v36, 0  ;;  %vm916_vm2 = vcmp.eq.s32.totalorder %v915_v38, 0 }
 0x137   :  { %v609_v40 = vpop.f32.mrf.mxu0 }
 0x13a   :  { %v623_v41 = vpop.f32.mrf.mxu1 }
 0x13b   :  { %v624_v43 = vadd.f32 %v623_v41, %v609_v40  ;;  %v911_v41 = vand.u32 1, %v898_v33 }
 0x13d   :  { %vm912_vm8 = vcmp.eq.s32.totalorder %v911_v41, 0 }
 0x13f   :  { %v611_v49 = vpop.f32.mrf.mxu0 }
 0x142   :  { %v625_v50 = vpop.f32.mrf.mxu1 }
 0x143   :  { %v637_v44 = vpop.f32.mrf.mxu2  ;;  %v626_v54 = vadd.f32 %v625_v50, %v611_v49 }
 0x144   :  { %v638_v47 = vadd.f32 %v637_v44, %v624_v43 }
 0x146   :  { %v651_v45 = vpop.f32.mrf.mxu3 }
 0x147   :  { %v652_v52 = vadd.f32 %v651_v45, %v638_v47 }
 0x149   :  { %v722_v59 = vadd.f32 %v718_v53, %v652_v52 }
 0x14b   :  { %v639_v55 = vpop.f32.mrf.mxu2  ;;  %v726_v63 = vmax.f32 %v722_v59, 0.0 }
 0x14c   :  { %v640_v57 = vadd.f32 %v639_v55, %v626_v54 }
 0x14e   :  { %v653_v58 = vpop.f32.mrf.mxu3 }
 0x14f   :  { %v654_v60 = vadd.f32 %v653_v58, %v640_v57 }
 0x151   :  { %v724_v62 = vadd.f32 %v718_v53, %v654_v60 }
 0x152   :  { %v907_v34 = vpop.permute.xlu0 %906 }
 0x153   :  { %v728_v0 = vmax.f32 %v724_v62, 0.0  ;;  %v908_v35 = vsub.s32 %v907_v34, %v893_v23 }
 0x155   :  { %v730_v1 = vpack.c.bf16 %v728_v0, %v726_v63  ;;  %v909_v37 = vand.u32 127, %v908_v35 }
 0x157   :  { %872 = vmatmul.bf16.vlgmr.msra.gmra.mxu0 %v730_v1  ;;  %v669_v2 = vpop.f32.mrf.mxu0  ;;  %vm910_vm1 = vcmp.eq.s32.totalorder %v909_v37, 1 }
 0x158   :  { %v683_v3 = vpop.f32.mrf.mxu1  ;;  %vm939_vm3 = vmxor %vm914_vm0, %vm910_vm1 }
 0x159   :  { %v684_v6 = vadd.f32 %v683_v3, %v669_v2  ;;  %vm1743_vm5 = vmxor %vm939_vm3, %vm1460_vm4 }
 0x15a   :  { %vm953_vm6 = vmxor %vm916_vm2, %vm910_vm1 }
 0x15b   :  { %vm1747_vm7 = vmxor %vm953_vm6, %vm1460_vm4 }
 0x15c   :  { %vm925_vm9 = vmxor %vm912_vm8, %vm910_vm1 }
 0x15d   :  { %vm1751_vm10 = vmxor %vm925_vm9, %vm1460_vm4 }
 0x15f   :  { %v671_v8 = vpop.f32.mrf.mxu0 }
 0x160   :  { %v685_v9 = vpop.f32.mrf.mxu1 }
 0x161   :  { %v686_v10 = vadd.f32 %v685_v9, %v671_v8 }
 0x163   :  { %v697_v4 = vpop.f32.mrf.mxu2 }
 0x164   :  { %v698_v7 = vadd.f32 %v697_v4, %v684_v6 }
 0x165   :  { %v711_v5 = vpop.f32.mrf.mxu3 }
 0x166   :  { %v712_v11 = vadd.f32 %v711_v5, %v698_v7 }
 0x168   :  { %v723_v16 = vadd.f32 %v719_v12, %v712_v11 }
 0x16a   :  { %v727_v19 = vmax.f32 %v723_v16, 0.0 }
 0x16b   :  { %v699_v13 = vpop.f32.mrf.mxu2 }
 0x16c   :  { %v700_v14 = vadd.f32 %v699_v13, %v686_v10 }
 0x16d   :  { %v713_v15 = vpop.f32.mrf.mxu3 }
 0x16e   :  { %v714_v17 = vadd.f32 %v713_v15, %v700_v14 }
 0x170   :  { %v725_v18 = vadd.f32 %v719_v12, %v714_v17 }
 0x172   :  { %v729_v20 = vmax.f32 %v725_v18, 0.0 }
 0x174   :  { %v731_v21 = vpack.c.bf16 %v729_v20, %v727_v19 }
 0x176   :  { %886 = vmatmul.bf16.vlgmr.msra.gmra.mxu1 %v731_v21 }
 0x1d4   :  { %v873_v24 = vpop.f32.mrf.mxu0 }
 0x1d5   :  { %v874_v26 = vadd.f32 %v1391_v25, %v873_v24 }
 0x1dc   :  { %v875_v30 = vpop.f32.mrf.mxu0 }
 0x1dd   :  { %v876_v31 = vadd.f32 %v1391_v25, %v875_v30 }
 0x1f3   :  { %v887_v27 = vpop.f32.mrf.mxu1 }
 0x1f4   :  { %v888_v29 = vadd.f32 %v887_v27, %v874_v26 }
 0x1f6   :  { %917 = vrot.lane.b32.xlu0 %v888_v29, %s1458_s4 }
 0x1fb   :  { %v889_v28 = vpop.f32.mrf.mxu1 }
 0x1fc   :  { %v1736_v32 = vadd.f32 %v889_v28, %v876_v31 }
 0x1fe   :  { %923 = vrot.lane.b32.xlu2 %v1736_v32, %s1459_s22  ;;  %919 = vrot.lane.b32.xlu1 %v1736_v32, %s1458_s4 }
 0x206   :  { %921 = vrot.lane.b32.xlu1 %v888_v29, %s1459_s22 }
 0x258   :  { %v924_v43 = vpop.permute.xlu2 %923 }
 0x268   :  { %v918_v47 = vpop.permute.xlu0 %917 }
 0x270   :  { %v920_v44 = vpop.permute.xlu1 %919 }
 0x271   :  { %v928_v45 = vsel %vm1751_vm10, %v920_v44, %v924_v43 }
 0x272   :  { %v930_v46 = vmax.f32 %v1736_v32, %v928_v45 }
 0x274   :  { %933 = vrot.lane.b32.xlu0 %v930_v46, %s1461_s6 }
 0x278   :  { %v922_v48 = vpop.permute.xlu1 %921 }
 0x279   :  { %v927_v49 = vsel %vm1751_vm10, %v918_v47, %v922_v48 }
 0x27a   :  { %v929_v50 = vmax.f32 %v888_v29, %v927_v49 }
 0x27c   :  { %935 = vrot.lane.b32.xlu1 %v929_v50, %s1462_s23  ;;  %931 = vrot.lane.b32.xlu2 %v929_v50, %s1461_s6 }
 0x284   :  { %937 = vrot.lane.b32.xlu2 %v930_v46, %s1462_s23 }
 0x2d6   :  { %v932_v51 = vpop.permute.xlu2 %931 }
 0x2de   :  { %v938_v52 = vpop.permute.xlu2 %937 }
 0x2e6   :  { %v934_v53 = vpop.permute.xlu0 %933 }
 0x2e7   :  { %v942_v54 = vsel %vm1743_vm5, %v934_v53, %v938_v52 }
 0x2e8   :  { %v944_v55 = vmax.f32 %v930_v46, %v942_v54 }
 0x2ea   :  { %947 = vrot.lane.b32.xlu1 %v944_v55, %s1457_s14 }
 0x2ee   :  { %v936_v56 = vpop.permute.xlu1 %935 }
 0x2ef   :  { %v941_v57 = vsel %vm1743_vm5, %v932_v51, %v936_v56 }
 0x2f0   :  { %v943_v58 = vmax.f32 %v929_v50, %v941_v57 }
 0x2f2   :  { %949 = vrot.lane.b32.xlu2 %v943_v58, %s1463_s24  ;;  %945 = vrot.lane.b32.xlu0 %v943_v58, %s1457_s14 }
 0x2fa   :  { %951 = vrot.lane.b32.xlu0 %v944_v55, %s1463_s24 }
 0x34c   :  { %v950_v59 = vpop.permute.xlu2 %949 }
 0x35c   :  { %v948_v1 = vpop.permute.xlu1 %947 }
 0x364   :  { %v946_v60 = vpop.permute.xlu0 %945 }
 0x365   :  { %v955_v61 = vsel %vm1747_vm7, %v946_v60, %v950_v59 }
 0x366   :  { %v957_v62 = vmax.f32 %v943_v58, %v955_v61 }
 0x368   :  { %v959_v63 = vsub.f32 %v888_v29, %v957_v62 }
 0x36a   :  { %v961_v0 = vmul.f32 1.442695, %v959_v63 }
 0x36c   :  { %1392 = vpow2.f32 %v961_v0  ;;  %v952_v2 = vpop.permute.xlu0 %951 }
 0x36d   :  { %v956_v3 = vsel %vm1747_vm7, %v948_v1, %v952_v2 }
 0x36e   :  { %v958_v4 = vmax.f32 %v944_v55, %v956_v3 }
 0x370   :  { %v960_v5 = vsub.f32 %v1736_v32, %v958_v4 }
 0x372   :  { %v1393_v6 = vpop.eup %1392  ;;  %v963_v7 = vmul.f32 1.442695, %v960_v5 }
 0x373   :  { %969 = vrot.lane.b32.xlu0 %v1393_v6, %s1459_s22  ;;  %965 = vrot.lane.b32.xlu1 %v1393_v6, %s1458_s4 }
 0x374   :  { %1394 = vpow2.f32 %v963_v7 }
 0x37a   :  { %v1779_v8 = vpop.eup %1394 }
 0x37b   :  { %971 = vrot.lane.b32.xlu1 %v1779_v8, %s1459_s22  ;;  %967 = vrot.lane.b32.xlu2 %v1779_v8, %s1458_s4 }
 0x3d5   :  { %v968_v13 = vpop.permute.xlu2 %967 }
 0x3e5   :  { %v966_v9 = vpop.permute.xlu1 %965  ;;  %v970_v10 = vpop.permute.xlu0 %969 }
 0x3e6   :  { %v973_v11 = vsel %vm1751_vm10, %v966_v9, %v970_v10 }
 0x3e7   :  { %v975_v12 = vadd.f32 %v1393_v6, %v973_v11 }
 0x3e9   :  { %981 = vrot.lane.b32.xlu1 %v975_v12, %s1462_s23  ;;  %977 = vrot.lane.b32.xlu2 %v975_v12, %s1461_s6 }
 0x3ed   :  { %v972_v14 = vpop.permute.xlu1 %971 }
 0x3ee   :  { %v974_v15 = vsel %vm1751_vm10, %v968_v13, %v972_v14 }
 0x3ef   :  { %v976_v16 = vadd.f32 %v1779_v8, %v974_v15 }
 0x3f1   :  { %979 = vrot.lane.b32.xlu0 %v976_v16, %s1461_s6  ;;  %983 = vrot.lane.b32.xlu2 %v976_v16, %s1462_s23 }
 0x443   :  { %v978_v17 = vpop.permute.xlu2 %977 }
 0x44b   :  { %v984_v21 = vpop.permute.xlu2 %983 }
 0x45b   :  { %v982_v18 = vpop.permute.xlu1 %981 }
 0x45c   :  { %v985_v19 = vsel %vm1743_vm5, %v978_v17, %v982_v18 }
 0x45d   :  { %v987_v20 = vadd.f32 %v985_v19, %v975_v12 }
 0x45f   :  { %993 = vrot.lane.b32.xlu2 %v987_v20, %s1463_s24  ;;  %989 = vrot.lane.b32.xlu0 %v987_v20, %s1457_s14 }
 0x463   :  { %v980_v22 = vpop.permute.xlu0 %979 }
 0x464   :  { %v986_v23 = vsel %vm1743_vm5, %v980_v22, %v984_v21 }
 0x465   :  { %v988_v24 = vadd.f32 %v986_v23, %v976_v16 }
 0x467   :  { %995 = vrot.lane.b32.xlu0 %v988_v24, %s1463_s24  ;;  %991 = vrot.lane.b32.xlu1 %v988_v24, %s1457_s14 }
 0x4b9   :  { %v994_v25 = vpop.permute.xlu2 %993 }
 0x4d1   :  { %v990_v26 = vpop.permute.xlu0 %989 }
 0x4d2   :  { %v997_v27 = vsel %vm1747_vm7, %v990_v26, %v994_v25 }
 0x4d3   :  { %v999_v29 = vadd.f32 %v997_v27, %v987_v20 }
 0x4d5   :  { %1396 = vrcp.f32 %v999_v29  ;;  %v1012_v36 = vand.u32 2147483648, %v999_v29  ;;  %v1010_v38 = vand.u32 2147483647, %v999_v29  ;;  %vm1006_vm12 = vweird.f32 %v999_v29 }
 0x4d7   :  { %v1013_v42 = vor.u32 1.1754944e-38, %v1012_v36  ;;  %vm1011_vm14 = vcmp.eq.f32.partialorder %v1010_v38, 8.507059e+37 }
 0x4d9   :  { %v992_v30 = vpop.permute.xlu1 %991  ;;  %v996_v31 = vpop.permute.xlu0 %995 }
 0x4da   :  { %v998_v28 = vsel %vm1747_vm7, %v992_v30, %v996_v31 }
 0x4db   :  { %v1397_v32 = vpop.eup %1396  ;;  %v1000_v33 = vadd.f32 %v998_v28, %v988_v24 }
 0x4dc   :  { %v1002_v34 = vmul.f32 %v1397_v32, %v999_v29  ;;  %vm1007_vm11 = vweird.f32 %v1397_v32 }
 0x4dd   :  { %1398 = vrcp.f32 %v1000_v33  ;;  %vm1008_vm13 = vmor %vm1006_vm12, %vm1007_vm11  ;;  %v1027_v47 = vand.u32 2147483648, %v1000_v33  ;;  %v1025_v49 = vand.u32 2147483647, %v1000_v33  ;;  %vm1021_vm0 = vweird.f32 %v1000_v33 }
 0x4de   :  { %v1003_v35 = vsub.f32 1.0, %v1002_v34 }
 0x4df   :  { %v1028_v51 = vor.u32 1.1754944e-38, %v1027_v47  ;;  %vm1026_vm2 = vcmp.eq.f32.partialorder %v1025_v49, 8.507059e+37 }
 0x4e0   :  { %v1004_v37 = vmul.f32 %v1397_v32, %v1003_v35 }
 0x4e2   :  { %v1005_v39 = vadd.f32 %v1397_v32, %v1004_v37 }
 0x4e3   :  { %v1399_v41 = vpop.eup %1398 }
 0x4e4   :  { %v1009_v43 = vsel %vm1008_vm13, %v1397_v32, %v1005_v39  ;;  %v1017_v44 = vmul.f32 %v1399_v41, %v1000_v33  ;;  %vm1022_vm15 = vweird.f32 %v1399_v41 }
 0x4e5   :  { %v1014_v45 = vsel %vm1011_vm14, %v1013_v42, %v1009_v43  ;;  %vm1023_vm1 = vmor %vm1021_vm0, %vm1022_vm15 }
 0x4e6   :  { %v1015_v40 = vmul.f32 %v1393_v6, %v1014_v45  ;;  %v1018_v46 = vsub.f32 1.0, %v1017_v44 }
 0x4e8   :  { %1031 = vst [vmem:[%s1820_s7] sm:$0xff] %v1015_v40  ;;  %v1019_v48 = vmul.f32 %v1399_v41, %v1018_v46 }
 0x4ea   :  { %v1020_v50 = vadd.f32 %v1399_v41, %v1019_v48 }
 0x4ec   :  { %v1024_v52 = vsel %vm1023_vm1, %v1399_v41, %v1020_v50 }
 0x4ed   :  { %v1029_v53 = vsel %vm1026_vm2, %v1028_v51, %v1024_v52 }
 0x4ee   :  { %v1030_v54 = vmul.f32 %v1779_v8, %v1029_v53 }
 0x4f0   :  { %1032 = vst [vmem:[%s1820_s7 + $0x8] sm:$0xff] %v1030_v54 }
 0x4f1   :  { %1037 = vsyncpa [#allocation3], 1 }
 0x4f2   :  { %1038 = vsyncpa [#allocation5], 1 }

</bundles_post_ra>
